<compile_context>
chip_gen: v7x
topology: tpu7x:2x2x1
jax: 0.10.0
libtpu: 0.0.40
codegen_flags: <defaults>
</compile_context>

<pallas_src>
import functools

import jax
import jax.numpy as jnp
from jax.experimental import pallas as pl
from jax.experimental.pallas import tpu as pltpu


def _sublane_multiple(dtype) -> int:
    return {4: 8, 2: 16, 1: 32}.get(jnp.dtype(dtype).itemsize, 8)


def _round_up(x: int, m: int) -> int:
    return ((x + m - 1) // m) * m


def _tpu_vmem_capacity_bytes() -> int:
    try:
        return int(pltpu.get_tpu_info().vmem_capacity_bytes)
    except Exception:
        return 64 << 20   # conservative (v7x-sized) fallback


def _default_core_splits() -> int:
    try:
        kind = jax.devices()[0].device_kind.lower()
    except Exception:
        return 1
    if "lite" in kind:                      # v5e / v6e "lite" variants: 1 TC
        return 1
    if any(t in kind for t in ("v7", "v4", "v5p")):
        return 2                            # dual-TC / megacore chips
    return 1


def _ls_ce_kernel(logits_ref, tgt_ref, out_ref, acc_ref, *, smoothing,
                  num_classes, ignore_index, n_rows, row_tile, c_tile,
                  num_tiles, steps_per_split, c_steps):
    c = pl.program_id(0)    # core-split axis ("parallel")
    s = pl.program_id(1)    # row-tile reduction axis ("arbitrary")
    cc = pl.program_id(2)   # class-chunk reduction axis ("arbitrary")

    @pl.when((s == 0) & (cc == 0))
    def _():
        acc_ref[...] = jnp.zeros_like(acc_ref)

    linear_tile = c * steps_per_split + s

    # Skip duplicate (clamped) tiles on the last split entirely.
    @pl.when(linear_tile < num_tiles)
    def _():
        logits = logits_ref[...]             # (row_tile, c_tile), native dtype
        tgt = tgt_ref[...]                   # (row_tile, 1) int32

        smooth_val = smoothing / (num_classes - 1)
        confidence = 1.0 - smoothing

        # (1, c_tile) class indices for this chunk, broadcast against targets.
        cls_idx = (jax.lax.broadcasted_iota(jnp.int32, (1, c_tile), 1)
                   + cc * c_tile)
        onehot = cls_idx == tgt              # (row_tile, c_tile) bool

        # Single fused pass: weight select + multiply in the native dtype,
        # widen only inside the lane reduction (f32 accumulation).
        w = jnp.where(onehot,
                      jnp.asarray(confidence, dtype=logits.dtype),
                      jnp.asarray(smooth_val, dtype=logits.dtype))
        contrib = logits * w
        if c_steps > 1 and (num_classes % c_tile) != 0:
            # Last class chunk reads lane padding; zero it AFTER the multiply
            # so NaN/Inf garbage cannot leak through.
            contrib = jnp.where(cls_idx < num_classes, contrib,
                                jnp.zeros_like(contrib))
        row_partial = jnp.sum(contrib.astype(jnp.float32), axis=1,
                              keepdims=True)              # (row_tile, 1) f32

        # Row validity: ignore_index rows and rows past N (ragged last tile).
        row_idx = (linear_tile * row_tile
                   + jax.lax.broadcasted_iota(jnp.int32, tgt.shape, 0))
        valid = (tgt != ignore_index) & (row_idx < n_rows)
        acc_ref[...] += jnp.where(valid, -row_partial, 0.0)

    @pl.when((s == steps_per_split - 1) & (cc == c_steps - 1))
    def _():
        out_ref[...] = jnp.zeros_like(out_ref) + jnp.sum(acc_ref[...])


def label_smoothed_cross_entropy(logits, targets, *, num_classes,
                                 ignore_index, smoothing=0.1,
                                 reduction="sum", row_tile=None,
                                 class_tile=None, num_core_splits=None):
    """logits: (N, C) float (f32 or bf16), targets: (N,) int."""
    assert smoothing > 0.0, "smoothing == 0 path not implemented in-kernel"
    # TODO(synk): smoothing == 0.0 falls back to plain cross entropy
    # (F.cross_entropy) in the original module; not implemented here.
    N, C = logits.shape
    itemsize = jnp.dtype(logits.dtype).itemsize
    sub = _sublane_multiple(logits.dtype)

    # Generation-dependent tile budget (bytes per logits block).
    vmem_cap = _tpu_vmem_capacity_bytes()
    big_vmem = vmem_cap >= (100 << 20)       # v5e/v6e: 128 MiB; v7x: 64 MiB
    target_bytes = (8 << 20) if big_vmem else (4 << 20)

    # Class (lane) tiling: cap tile BYTES even for vocab-sized C.
    if class_tile is None:
        if C * itemsize * sub <= target_bytes:
            c_tile = C
        else:
            c_tile = max(128, (target_bytes // (sub * itemsize)) // 128 * 128)
            if c_tile >= C:
                c_tile = C
    else:
        c_tile = int(class_tile)
        if c_tile < C:
            c_tile = max(128, (c_tile // 128) * 128)   # lane-aligned chunks
        if c_tile >= C:
            c_tile = C
    c_steps = int(pl.cdiv(C, c_tile))

    # Row (sublane) tiling.
    if row_tile is None:
        row_tile = max(sub, (target_bytes // max(1, c_tile * itemsize))
                       // sub * sub)
    row_tile = max(sub, _round_up(int(row_tile), sub))
    row_tile = min(row_tile, _round_up(N, sub))

    num_tiles = int(pl.cdiv(N, row_tile))
    if num_core_splits is None:
        num_core_splits = _default_core_splits()
    num_core_splits = max(1, min(int(num_core_splits), num_tiles))
    steps = int(pl.cdiv(num_tiles, num_core_splits))

    # VMEM limit: double-buffered inputs + ~3x f32-tile elementwise headroom.
    logits_tile_bytes = row_tile * c_tile * itemsize
    tile_f32_bytes = row_tile * c_tile * 4
    vmem_limit = (2 * (logits_tile_bytes + row_tile * 4)
                  + 3 * tile_f32_bytes
                  + row_tile * 4 + (2 << 20))
    vmem_cap_limit = (96 << 20) if big_vmem else (48 << 20)
    vmem_limit = int(min(max(vmem_limit, 8 << 20), vmem_cap_limit))

    cost = pl.CostEstimate(
        flops=int(2 * N * C),
        transcendentals=0,
        bytes_accessed=int(N * C * itemsize + N * 4 + 4 * num_core_splits),
    )

    tgt_col = targets.astype(jnp.int32).reshape(N, 1)

    kernel = functools.partial(
        _ls_ce_kernel,
        smoothing=float(smoothing), num_classes=int(num_classes),
        ignore_index=int(ignore_index), n_rows=int(N), row_tile=int(row_tile),
        c_tile=int(c_tile), num_tiles=num_tiles, steps_per_split=steps,
        c_steps=c_steps)

    def _row_block(c, s):
        # Clamp to the last valid tile; duplicates are skipped in-kernel.
        return jnp.minimum(c * steps + s, num_tiles - 1)

    partials = pl.pallas_call(
        kernel,
        out_shape=jax.ShapeDtypeStruct((num_core_splits, 1, 1), jnp.float32),
        grid_spec=pltpu.PrefetchScalarGridSpec(
            num_scalar_prefetch=0,
            grid=(num_core_splits, steps, c_steps),
            in_specs=[
                pl.BlockSpec((row_tile, c_tile),
                             lambda c, s, cc: (_row_block(c, s), cc)),
                pl.BlockSpec((row_tile, 1),
                             lambda c, s, cc: (_row_block(c, s), 0)),
            ],
            out_specs=pl.BlockSpec((1, 1, 1), lambda c, s, cc: (c, 0, 0)),
            scratch_shapes=[pltpu.VMEM((row_tile, 1), jnp.float32)],
        ),
        compiler_params=pltpu.CompilerParams(
            dimension_semantics=("parallel", "arbitrary", "arbitrary"),
            vmem_limit_bytes=vmem_limit),
        cost_estimate=cost,
    )(logits, tgt_col)

    total = jnp.sum(partials)
    if reduction == "sum":
        return total
    elif reduction == "mean":
        # torch.mean over the full (N, C) elementwise product
        return total / jnp.float32(N * C)
    else:
        raise ValueError(f"Unsupported reduction {reduction}")


def _reference(logits, targets, *, num_classes, ignore_index, smoothing,
               reduction):
    logits = logits.astype(jnp.float32)
    smooth_val = smoothing / (num_classes - 1)
    confidence = 1.0 - smoothing
    onehot = jax.nn.one_hot(targets, num_classes, dtype=jnp.float32)
    label_smoothed = jnp.full_like(logits, smooth_val)
    label_smoothed = jnp.where(onehot > 0, confidence, label_smoothed)
    label_smoothed = jnp.where((targets == ignore_index)[:, None], 0.0,
                               label_smoothed)
    prod = -label_smoothed * logits
    return jnp.sum(prod) if reduction == "sum" else jnp.mean(prod)


if __name__ == "__main__":
    key = jax.random.PRNGKey(0)
    ignore_index = 2
    smoothing = 0.1
    k1, k2, k3, k4, k5, k6, k7, k8 = jax.random.split(key, 8)

    # Case 1: ragged N, several tiles, explicit 2-way core split
    # (exercises tail masking and the skipped duplicate-tile path).
    N1, C1 = 100, 37
    logits1 = jax.nn.log_softmax(
        jax.random.normal(k1, (N1, C1), dtype=jnp.float32), axis=-1)
    targets1 = jax.random.randint(k2, (N1,), 0, C1, dtype=jnp.int32)
    targets1 = targets1.at[3].set(ignore_index).at[N1 - 1].set(ignore_index)

    out1 = label_smoothed_cross_entropy(
        logits1, targets1, num_classes=C1, ignore_index=ignore_index,
        smoothing=smoothing, reduction="sum", row_tile=16, num_core_splits=2)
    out1 = jax.block_until_ready(out1)
    ref1 = _reference(logits1, targets1, num_classes=C1,
                      ignore_index=ignore_index, smoothing=smoothing,
                      reduction="sum")
    assert jnp.allclose(out1, ref1, atol=1e-3, rtol=1e-4), (out1, ref1)

    # Case 2: auto tile size (single tile), mean reduction, auto core splits.
    N2, C2 = 16, 32
    logits2 = jax.nn.log_softmax(
        jax.random.normal(k3, (N2, C2), dtype=jnp.float32), axis=-1)
    targets2 = jax.random.randint(k4, (N2,), 0, C2, dtype=jnp.int32)
    targets2 = targets2.at[5].set(ignore_index)

    out2 = label_smoothed_cross_entropy(
        logits2, targets2, num_classes=C2, ignore_index=ignore_index,
        smoothing=smoothing, reduction="mean")
    out2 = jax.block_until_ready(out2)
    ref2 = _reference(logits2, targets2, num_classes=C2,
                      ignore_index=ignore_index, smoothing=smoothing,
                      reduction="mean")
    assert jnp.allclose(out2, ref2, atol=1e-5, rtol=1e-4), (out2, ref2)

    # Case 3: class-chunking path (C tiled in 128-lane chunks, ragged last
    # chunk) combined with the 2-way core split and ragged rows.
    N3, C3 = 64, 300
    logits3 = jax.nn.log_softmax(
        jax.random.normal(k5, (N3, C3), dtype=jnp.float32), axis=-1)
    targets3 = jax.random.randint(k6, (N3,), 0, C3, dtype=jnp.int32)
    targets3 = targets3.at[0].set(ignore_index).at[17].set(ignore_index)

    out3 = label_smoothed_cross_entropy(
        logits3, targets3, num_classes=C3, ignore_index=ignore_index,
        smoothing=smoothing, reduction="sum", row_tile=16, class_tile=128,
        num_core_splits=2)
    out3 = jax.block_until_ready(out3)
    ref3 = _reference(logits3, targets3, num_classes=C3,
                      ignore_index=ignore_index, smoothing=smoothing,
                      reduction="sum")
    assert jnp.allclose(out3, ref3, atol=1e-3, rtol=1e-4), (out3, ref3)

    # Case 4: bf16 logits, native-dtype multiply with f32 accumulation.
    N4, C4 = 48, 200
    logits4 = jax.nn.log_softmax(
        jax.random.normal(k7, (N4, C4), dtype=jnp.float32),
        axis=-1).astype(jnp.bfloat16)
    targets4 = jax.random.randint(k8, (N4,), 0, C4, dtype=jnp.int32)
    targets4 = targets4.at[7].set(ignore_index)

    out4 = label_smoothed_cross_entropy(
        logits4, targets4, num_classes=C4, ignore_index=ignore_index,
        smoothing=smoothing, reduction="sum")
    out4 = jax.block_until_ready(out4)
    ref4 = _reference(logits4, targets4, num_classes=C4,
                      ignore_index=ignore_index, smoothing=smoothing,
                      reduction="sum")
    assert jnp.allclose(out4, ref4, atol=1e-1, rtol=2e-2), (out4, ref4)

    print("KERNEL_OK")
</pallas_src>

<mosaic_0001>
module attributes {stable_mosaic.version = 11 : i64} {
  func.func @_ls_ce_kernel(%arg0: i32, %arg1: i32, %arg2: i32, %arg3: memref<16x37xf32, #tpu.memory_space<vmem>>, %arg4: memref<16x1xi32, #tpu.memory_space<vmem>>, %arg5: memref<1x1x1xf32, #tpu.memory_space<vmem>>, %arg6: memref<16x1xf32, #tpu.memory_space<vmem>>) attributes {dimension_semantics = [#tpu.dimension_semantics<parallel>, #tpu.dimension_semantics<arbitrary>, #tpu.dimension_semantics<arbitrary>], iteration_bounds = array<i64: 2, 4, 1>, scalar_prefetch = 0 : i64, scratch_operands = 1 : i64, tpu.core_type = #tpu.core_type<tc>, window_params = [{transform_indices = @transform_0, window_bounds = array<i64: 16, 37>}, {transform_indices = @transform_1, window_bounds = array<i64: 16, 1>}, {transform_indices = @transform_2, window_bounds = array<i64: 1, 1, 1>}]} {
    %c0_i32 = arith.constant 0 : i32
    %0 = arith.cmpi eq, %arg1, %c0_i32 : i32
    %c0_i32_0 = arith.constant 0 : i32
    %1 = arith.cmpi eq, %arg2, %c0_i32_0 : i32
    %2 = arith.andi %0, %1 : i1
    %3 = arith.extui %2 : i1 to i32
    %c0_i32_1 = arith.constant 0 : i32
    %4 = arith.cmpi ne, %3, %c0_i32_1 : i32
    scf.if %4 {
      %cst = arith.constant 0.000000e+00 : f32
      %15 = vector.broadcast %cst : f32 to vector<16x1xf32>
      %c0 = arith.constant 0 : index
      %c0_5 = arith.constant 0 : index
      %16 = vector.load %arg6[%c0, %c0_5] : memref<16x1xf32, #tpu.memory_space<vmem>>, vector<16x1xf32>
      tpu.vector_store %arg6[%c0, %c0_5], %15 {strides = array<i32>} : memref<16x1xf32, #tpu.memory_space<vmem>>, vector<16x1xf32>,
    } else {
    }
    %c4_i32 = arith.constant 4 : i32
    %5 = arith.muli %arg0, %c4_i32 : i32
    %6 = arith.addi %5, %arg1 : i32
    %c7_i32 = arith.constant 7 : i32
    %7 = arith.cmpi slt, %6, %c7_i32 : i32
    %8 = arith.extui %7 : i1 to i32
    %c0_i32_2 = arith.constant 0 : i32
    %9 = arith.cmpi ne, %8, %c0_i32_2 : i32
    scf.if %9 {
      %c0 = arith.constant 0 : index
      %c0_5 = arith.constant 0 : index
      %15 = vector.load %arg3[%c0, %c0_5] : memref<16x37xf32, #tpu.memory_space<vmem>>, vector<16x37xf32>
      %c0_6 = arith.constant 0 : index
      %c0_7 = arith.constant 0 : index
      %16 = vector.load %arg4[%c0_6, %c0_7] : memref<16x1xi32, #tpu.memory_space<vmem>>, vector<16x1xi32>
      %17 = tpu.iota {dimensions = array<i32: 1>} : vector<1x37xi32>
      %c37_i32 = arith.constant 37 : i32
      %18 = arith.muli %arg2, %c37_i32 : i32
      %19 = vector.broadcast %18 : i32 to vector<1x37xi32>
      %20 = arith.addi %17, %19 : vector<1x37xi32>
      %21 = vector.broadcast %20 : vector<1x37xi32> to vector<16x37xi32>
      %22 = vector.broadcast %16 : vector<16x1xi32> to vector<16x37xi32>
      %23 = arith.cmpi eq, %21, %22 : vector<16x37xi32>
      %cst = arith.constant 0.899999976 : f32
      %cst_8 = arith.constant 0.00277777785 : f32
      %24 = vector.broadcast %cst : f32 to vector<16x37xf32>
      %25 = vector.broadcast %cst_8 : f32 to vector<16x37xf32>
      %26 = arith.select %23, %24, %25 : vector<16x37xi1>, vector<16x37xf32>
      %27 = arith.mulf %15, %26 : vector<16x37xf32>
      %cst_9 = arith.constant dense<0.000000e+00> : vector<16xf32>
      %28 = vector.multi_reduction <add>, %27, %cst_9 [1] : vector<16x37xf32> to vector<16xf32>
      %29 = vector.shape_cast %28 : vector<16xf32> to vector<16x1xf32>
      %c16_i32 = arith.constant 16 : i32
      %30 = arith.muli %6, %c16_i32 : i32
      %31 = tpu.iota {dimensions = array<i32: 0>} : vector<16x1xi32>
      %32 = vector.broadcast %30 : i32 to vector<16x1xi32>
      %33 = arith.addi %32, %31 : vector<16x1xi32>
      %c2_i32 = arith.constant 2 : i32
      %34 = vector.broadcast %c2_i32 : i32 to vector<16x1xi32>
      %35 = arith.cmpi ne, %16, %34 : vector<16x1xi32>
      %c100_i32 = arith.constant 100 : i32
      %36 = vector.broadcast %c100_i32 : i32 to vector<16x1xi32>
      %37 = arith.cmpi slt, %33, %36 : vector<16x1xi32>
      %38 = arith.andi %35, %37 : vector<16x1xi1>
      %c0_10 = arith.constant 0 : index
      %c0_11 = arith.constant 0 : index
      %39 = vector.load %arg6[%c0_10, %c0_11] : memref<16x1xf32, #tpu.memory_space<vmem>>, vector<16x1xf32>
      %cst_12 = arith.constant 0.000000e+00 : f32
      %40 = vector.broadcast %cst_12 : f32 to vector<16x1xf32>
      %41 = arith.subf %40, %29 : vector<16x1xf32>
      %cst_13 = arith.constant 0.000000e+00 : f32
      %42 = vector.broadcast %cst_13 : f32 to vector<16x1xf32>
      %43 = arith.select %38, %41, %42 : vector<16x1xi1>, vector<16x1xf32>
      %44 = arith.addf %39, %43 : vector<16x1xf32>
      %c0_14 = arith.constant 0 : index
      %c0_15 = arith.constant 0 : index
      %45 = vector.load %arg6[%c0_14, %c0_15] : memref<16x1xf32, #tpu.memory_space<vmem>>, vector<16x1xf32>
      tpu.vector_store %arg6[%c0_14, %c0_15], %44 {strides = array<i32>} : memref<16x1xf32, #tpu.memory_space<vmem>>, vector<16x1xf32>,
    } else {
    }
    %c3_i32 = arith.constant 3 : i32
    %10 = arith.cmpi eq, %arg1, %c3_i32 : i32
    %c0_i32_3 = arith.constant 0 : i32
    %11 = arith.cmpi eq, %arg2, %c0_i32_3 : i32
    %12 = arith.andi %10, %11 : i1
    %13 = arith.extui %12 : i1 to i32
    %c0_i32_4 = arith.constant 0 : i32
    %14 = arith.cmpi ne, %13, %c0_i32_4 : i32
    scf.if %14 {
      %cst = arith.constant 0.000000e+00 : f32
      %15 = vector.broadcast %cst : f32 to vector<1x1x1xf32>
      %c0 = arith.constant 0 : index
      %c0_5 = arith.constant 0 : index
      %16 = vector.load %arg6[%c0, %c0_5] : memref<16x1xf32, #tpu.memory_space<vmem>>, vector<16x1xf32>
      %17 = vector.shape_cast %16 : vector<16x1xf32> to vector<1x16x1xf32>
      %cst_6 = arith.constant dense<0.000000e+00> : vector<1xf32>
      %18 = vector.multi_reduction <add>, %17, %cst_6 [1, 2] : vector<1x16x1xf32> to vector<1xf32>
      %19 = vector.shape_cast %18 : vector<1xf32> to vector<1x1x1xf32>
      %20 = vector.extract %19[0, 0, 0] : f32 from vector<1x1x1xf32>
      %21 = vector.broadcast %20 : f32 to vector<1x1x1xf32>
      %22 = arith.addf %15, %21 : vector<1x1x1xf32>
      %c0_7 = arith.constant 0 : index
      %c0_8 = arith.constant 0 : index
      %c0_9 = arith.constant 0 : index
      %23 = vector.load %arg5[%c0_7, %c0_8, %c0_9] : memref<1x1x1xf32, #tpu.memory_space<vmem>>, vector<1x1x1xf32>
      tpu.vector_store %arg5[%c0_7, %c0_8, %c0_9], %22 {strides = array<i32>} : memref<1x1x1xf32, #tpu.memory_space<vmem>>, vector<1x1x1xf32>,
    } else {
    }
    return
  }
  func.func @transform_0(%arg0: i32, %arg1: i32, %arg2: i32) -> (i32, i32) {
    %c4_i32 = arith.constant 4 : i32
    %0 = arith.muli %arg0, %c4_i32 : i32
    %1 = arith.addi %0, %arg1 : i32
    %c6_i32 = arith.constant 6 : i32
    %2 = arith.minsi %1, %c6_i32 : i32
    %c0_i32 = arith.constant 0 : i32
    return %2, %arg2 : i32, i32
  }
  func.func @transform_1(%arg0: i32, %arg1: i32, %arg2: i32) -> (i32, i32) {
    %c4_i32 = arith.constant 4 : i32
    %0 = arith.muli %arg0, %c4_i32 : i32
    %1 = arith.addi %0, %arg1 : i32
    %c6_i32 = arith.constant 6 : i32
    %2 = arith.minsi %1, %c6_i32 : i32
    %c0_i32 = arith.constant 0 : i32
    %c0_i32_0 = arith.constant 0 : i32
    return %2, %c0_i32 : i32, i32
  }
  func.func @transform_2(%arg0: i32, %arg1: i32, %arg2: i32) -> (i32, i32, i32) {
    %c0_i32 = arith.constant 0 : i32
    %c0_i32_0 = arith.constant 0 : i32
    %c0_i32_1 = arith.constant 0 : i32
    return %arg0, %c0_i32, %c0_i32_0 : i32, i32, i32
  }
}

</mosaic_0001>

<bundles_post_ra>
// kernel: tpu_custom_call.1
= control target key start
LH: loop header
LB: loop body
LE: loop exit
PB: predicated region body
PF: predicated region fallthrough
CT: control target
= control target key end

     0   :  { %s585_s9 = smov 0   ;;  %s587_s10 = smov 0   ;;  %s662_s0 = inlined_call_operand.vmem [shape: f32[100,37], index: 0, kind: input, shape index: {}]   ;;  %s663_s1 = inlined_call_operand.vmem [shape: s32[100,1], index: 1, kind: input, shape index: {}]   ;;  %s664_s2 = inlined_call_operand.vmem [shape: f32[2,1,1], index: 2, kind: output, shape index: {}]  }
   0x1   :  { %s589_s11 = smov 0   ;;  %s591_s12 = smov 0  }
   0x2   :  { %s593_s13 = smov 0  }
   0x3 LB: > { %s27_s14 = sadd.s32 1, %s557_s11  ;;  %s31_s15 = sadd.s32 1, %s561_s12  ;;  %s565_s13 = sphi %s593_s13, %s12_s13   ;;  %s561_s12 = sphi %s591_s12, %s670_s12   ;;  %s557_s11 = sphi %s589_s11, %s669_s11   ;;  %s553_s10 = sphi %s587_s10, %s668_s10   ;;  %s549_s9 = sphi %s585_s9, %s667_s9  }
   0x4   : > { %p29_p0 = scmp.ge.s32.totalorder %s27_s14, 4  ;;  %p465_p1 = scmp.ge.s32.totalorder %s565_s13, 1 }
   0x5   : > { %p196_p2 = scmp.lt.s32.totalorder %s565_s13, 9 }
   0x6   : > { %s672_s14 = smov (%p29_p0, %s27_s14), 0  ;;  %s674_s15 = smov (!%p29_p0, %s31_s15), %s561_s12 }
   0x7   : > { %p197_p3 = pnand %p465_p1, %p196_p2  ;;  %p33_p4 = scmp.ge.s32.totalorder %s674_s15, 2 }
   0x8   : > { %s466_s16 = sshll.u32 (!%p197_p3), %s553_s10, 2  ;;  %p287_p5 = scmp.lt.s32.totalorder (!%p197_p3), %s553_s10, 1 }
   0x9   : > { %s676_s15 = smov (%p33_p4, %s674_s15), 0  ;;  %200 = sbr.rel (%p197_p3) target bundleno = 529 (0x211), region = 28 }
   0xa   : > { %s241_s17 = sadd.s32 (!%p197_p3), %s549_s9, %s466_s16  ;;  %p290_p6 = scmp.eq.s32.totalorder (!%p197_p3), %s549_s9, 0 }
   0xb   : > { %p242_p7 = scmp.lt.s32.totalorder (!%p197_p3), %s241_s17, 6 }
  0x10   : > { %s678_s10 = smov (!%p287_p5, %s553_s10), 1  ;;  %vm296_vm0 = vcmask (%p290_p6), 7168   ;;  %v567_v0 = vmov (%p290_p6), 0.0  }
  0x11   : > { %s243_s18 = scalar_select %p242_p7, %s241_s17, 6 }
  0x12   : > { %s289_s21 = scalar_lea.vmem %s664_s2, %s678_s10  ;;  %295 = sbr.rel (!%p290_p6) target bundleno = 25 (0x19), region = 32  ;;  %297 = vst.msk [vmem:[#allocation2] sm:$0xff] (%p290_p6), %vm296_vm0, %v567_v0  ;;  %298 = vst.msk [vmem:[#allocation2 + $0x8] sm:$0xff] (%p290_p6), %vm296_vm0, %v567_v0 }
  0x13   : > { %s467_s22 = sshll.u32 %s243_s18, 1 }
  0x14   : > { %p249_p8 = scmp.lt.s32.totalorder %s467_s22, 12 }
  0x16   : > { %s680_s22 = smov (!%p249_p8, %s467_s22), 12 }
  0x17   : > { %s468_s23 = sshll.u32 %s680_s22, 3 }
  0x18   : > { %s628_s26 = scalar_lea.vmem %s662_s0, %s468_s23  ;;  %s277_s29 = scalar_lea.vmem %s663_s1, %s468_s23 }
  0x19 PF: > { %p474_p9 = scmp.ge.s32.totalorder %s241_s17, 7 }
  0x1a   : > { %v307_v1 = vld [vmem:[%s277_s29] sm:$0xff] (!%p474_p9)  ;;  %v309_v2 = vlaneseq (!%p474_p9)  ;;  %s475_s30 = sshll.u32 (!%p474_p9), %s241_s17, 4  ;;  %v568_v3 = vmov (!%p474_p9), 0   ;;  %v308_v6 = vld [vmem:[%s277_s29 + $0x8] sm:$0xff] (!%p474_p9)  ;;  %v569_v12 = vmov (!%p474_p9), 0.0027777778  }
  0x1b   : > { %304 = sbr.rel (%p474_p9) target bundleno = 313 (0x139), region = 36  ;;  %526 = vset.pattern.permute.xlu0 (!%p474_p9), %v568_v3  ;;  %v337_v4 = vstv (!%p474_p9), %s475_s30  ;;  %vm340_vm1 = vcmp.ne.s32.totalorder (!%p474_p9), %v307_v1, 2  ;;  %v305_v11 = vld [vmem:[%s628_s26] sm:$0xff] (!%p474_p9)  ;;  %vm326_vm5 = vcmask (!%p474_p9), 302080   ;;  %v306_v16 = vld [vmem:[%s628_s26 + $0x8] sm:$0xff] (!%p474_p9)  ;;  %vm341_vm7 = vcmp.ne.s32.totalorder (!%p474_p9), %v308_v6, 2 }
  0x1c   : > { %v335_v5 = vshrl.u32 (!%p474_p9), %v309_v2, 7  ;;  %315 = vperm.xlu0 (!%p474_p9), %526, %v307_v1   ;;  %v310_v9 = vand.u32 (!%p474_p9), 127, %v309_v2  ;;  %v346_v24 = vld [vmem:[#allocation2] sm:$0xff] (!%p474_p9)  ;;  %vm354_vm10 = vcmask (!%p474_p9), 7168   ;;  %v347_v29 = vld [vmem:[#allocation2 + $0x8] sm:$0xff] (!%p474_p9) }
  0x1e   : > { %v338_v7 = vadd.s32 (!%p474_p9), %v337_v4, %v335_v5  ;;  %v336_v21 = vadd.s32 (!%p474_p9), 8, %v335_v5 }
  0x20   : > { %vm342_vm2 = vcmp.lt.s32.totalorder (!%p474_p9), %v338_v7, 100  ;;  %318 = vperm.xlu0 (!%p474_p9), %526, %v308_v6   ;;  %v339_v22 = vadd.s32 (!%p474_p9), %v337_v4, %v336_v21 }
  0x21   : > { %vm633_vm3 = vmand (!%p474_p9), %vm340_vm1, %vm342_vm2 }
  0x22   : > { %vm343_vm8 = vcmp.lt.s32.totalorder %v339_v22, 100 }
  0x23   : > { %vm345_vm9 = vmand %vm341_vm7, %vm343_vm8 }
  0x9b   : > { %v316_v10 = vpop.permute.xlu0 %315 }
  0x9c   : > { %vm320_vm4 = vcmp.eq.s32.totalorder %v310_v9, %v316_v10 }
  0x9d   : > { %v322_v13 = vsel %vm320_vm4, 0.9, %v569_v12 }
  0x9e   : > { %v324_v14 = vmul.f32 %v322_v13, %v305_v11 }
  0x9f   : > { %v319_v15 = vpop.permute.xlu0 %318 }
  0xa0   : > { %vm321_vm6 = vcmp.eq.s32.totalorder %v310_v9, %v319_v15  ;;  %v327_v17 = vsel %vm326_vm5, %v324_v14, 0.0 }
  0xa1   : > { %v323_v18 = vsel %vm321_vm6, 0.9, %v569_v12  ;;  %328 = vadd.xlane.f32.xlu1 %v327_v17 }
  0xa2   : > { %v325_v19 = vmul.f32 %v323_v18, %v306_v16 }
  0xa4   : > { %v330_v20 = vsel %vm326_vm5, %v325_v19, 0.0 }
  0xa5   : > { %331 = vadd.xlane.f32.xlu1 %v330_v20 }
 0x12e   : > { %v329_v23 = vpop.xlane.xlu1 %328 }
 0x12f   : > { %v348_v25 = vsub.f32 0.0, %v329_v23 }
 0x131   : > { %v350_v26 = vsel %vm633_vm3, %v348_v25, 0.0 }
 0x132   : > { %v352_v27 = vadd.f32 %v350_v26, %v346_v24  ;;  %v332_v28 = vpop.xlane.xlu1 %331 }
 0x133   : > { %v349_v30 = vsub.f32 0.0, %v332_v28 }
 0x134   : > { %355 = vst.msk [vmem:[#allocation2] sm:$0xff] %vm354_vm10, %v352_v27 }
 0x135   : > { %v351_v31 = vsel %vm345_vm9, %v349_v30, 0.0 }
 0x136   : > { %v353_v32 = vadd.f32 %v351_v31, %v347_v29 }
 0x138   : > { %356 = vst.msk [vmem:[#allocation2 + $0x8] sm:$0xff] %vm354_vm10, %v353_v32 }
 0x139 PF: > { %p357_p10 = scmp.eq.s32.totalorder %s549_s9, 3 }
 0x13a   : > { %vm364_vm11 = vcmask (%p357_p10), 7168   ;;  %vm379_vm12 = vcmask (%p357_p10), 0  }
 0x13b   : > { %361 = sbr.rel (!%p357_p10) target bundleno = 529 (0x211), region = 40  ;;  %v362_v33 = vld [vmem:[#allocation2] sm:$0xff] (%p357_p10) }
 0x13c   : > { %v365_v35 = vsel (%p357_p10), %vm364_vm11, %v362_v33, 0.0 }
 0x13f   : > { %v363_v34 = vld [vmem:[#allocation2 + $0x8] sm:$0xff] (%p357_p10) }
 0x140   : > { %v366_v36 = vsel (%p357_p10), %vm364_vm11, %v363_v34, 0.0 }
 0x141   : > { %v367_v37 = vadd.f32 (%p357_p10), %v366_v36, %v365_v35 }
 0x143   : > { %368 = vadd.xlane.f32.xlu0 %v367_v37 }
 0x1d0   : > { %v369_v38 = vpop.xlane.xlu0 %368 }
 0x1d1   : > { %v370_v39 = vrot.slane %v369_v38, 4 }
 0x1d3   : > { %v371_v40 = vadd.f32 %v370_v39, %v369_v38 }
 0x1d5   : > { %v372_v41 = vrot.slane %v371_v40, 2 }
 0x1d7   : > { %v373_v42 = vadd.f32 %v372_v41, %v371_v40 }
 0x1d9   : > { %v374_v43 = vrot.slane %v373_v42, 1 }
 0x1db   : > { %v375_v44 = vadd.f32 %v374_v43, %v373_v42 }
 0x1dd   : > { %481 = vpush %v375_v44 }
 0x20e   : > { %s482_s3 = spop %481 }
 0x20f   : > { %v377_v45 = vstv %s482_s3 }
 0x210   : > { %380 = vst.msk [vmem:[%s289_s21] sm:$0x1] %vm379_vm12, %v377_v45 }
 0x211 PF: > { %s12_s13 = sadd.s32 1, %s565_s13   ;;  %s667_s9 = smov %s557_s11 }
 0x212   : > { %p9_p11 = scmp.ge.s32.totalorder %s12_s13, 10   ;;  %s668_s10 = smov %s561_s12 }
 0x213   : > { %s669_s11 = smov %s672_s14  ;;  %s670_s12 = smov %s676_s15 }
 0x214   :  { %11 = sbr.rel (!%p9_p11) target bundleno = 3 (0x3), region = 73 }

</bundles_post_ra>
